<compile_context>
chip_gen: v5e
topology: v5e:2x2
jax: 0.10.0
libtpu: 0.0.40
codegen_flags: <defaults>
</compile_context>

<pallas_src>
import jax
import jax.numpy as jnp
from jax import lax
from jax.experimental import pallas as pl
from jax.experimental.pallas import tpu as pltpu

# ---- static configuration (small, consistent with the module) -------------
E        = 128                      # embedding_size
D_NUM    = 4                        # numeric feature width (feature.mean.shape[0])
V_CAT    = 16                       # categorical dictionary_size
V_ARR    = 16                       # categorical_array dictionary_size
L_ARR    = 4                        # bag length for the categorical-array feature
B        = 16                       # batch
TB       = B                        # batch tile == batch -> single grid step
K_PAD    = 128                      # fused contraction dim, padded to full lane width

ARR_OFF  = V_CAT                    # bag-weight columns start here
NUM_OFF  = V_CAT + V_ARR            # numeric columns start here
BIAS_COL = NUM_OFF + D_NUM          # ones column (bias row of fused table)


def tabular_encoder_kernel(x_pad_ref, ids_ref, table_ref, out_ref):
    # Single lane-dense iota reused for every compare.
    iota = lax.broadcasted_iota(jnp.int32, (TB, K_PAD), 1)        # (TB, 128)
    ids = ids_ref[...]                                            # (TB, 1 + L_ARR) int32

    # --- categorical one-hot in columns [0, V_CAT) -------------------------
    # TODO(synk): out-of-range ids (>= 16) silently contribute 0 / alias instead of
    # raising like torch nn.Embedding; inputs are assumed in-range.
    acts = (iota == ids[:, 0:1]).astype(jnp.float32)              # (TB, 128)

    # --- EmbeddingBag(mode='mean', padding_idx=0) weights in [V_CAT, V_CAT+V_ARR) ---
    counts = jnp.zeros((TB, K_PAD), jnp.float32)
    nnz = jnp.zeros((TB, 1), jnp.float32)                         # non-padding count
    for l in range(L_ARR):                                        # static unroll
        col = ids[:, 1 + l:2 + l] + ARR_OFF                       # (TB, 1)
        counts = counts + (iota == col).astype(jnp.float32)
        nnz = nnz + (col != ARR_OFF).astype(jnp.float32)          # narrow, no XLU reduce
    counts = jnp.where(iota == ARR_OFF, 0.0, counts)              # drop padding_idx=0
    # Empty bag -> 0 (max(nnz,1)); matches torch mean mode. Reciprocal lands on EUP.
    inv_nnz = pl.reciprocal(jnp.maximum(nnz, 1.0), approx=True)   # (TB, 1)
    acts = acts + counts * inv_nnz

    # --- numeric values (pre-padded wrapper-side) + in-kernel bias ones column ---
    acts = acts + x_pad_ref[...] + (iota == BIAS_COL).astype(jnp.float32)

    # --- one fused bf16 MXU pass: [onehot | bag_w | x | 1] @ [Ecat; Earr; W^T; b] ---
    out_ref[...] = jnp.dot(acts.astype(jnp.bfloat16), table_ref[...],
                           preferred_element_type=jnp.float32)


def prepare_tabular_params(w_num_t, b_num, emb_cat, emb_arr):
    """Build the fused (K_PAD, E) bf16 table ONCE (hoisted out of the forward path).

    Rows [0:16)=Embedding, [16:32)=EmbeddingBag, [32:36)=Linear W^T, [36]=bias, rest 0.
    """
    table = jnp.zeros((K_PAD, E), jnp.float32)
    table = table.at[0:V_CAT].set(emb_cat)
    table = table.at[ARR_OFF:ARR_OFF + V_ARR].set(emb_arr)
    table = table.at[NUM_OFF:NUM_OFF + D_NUM].set(w_num_t)
    table = table.at[BIAS_COL].set(b_num.reshape(E))
    return table.astype(jnp.bfloat16)


def tabular_encoder(x_num, cat_ids, arr_ids, table):
    # ---- per-call wrapper work: one pad + one concat (layout plumbing only) ----
    x_pad = jnp.pad(x_num.astype(jnp.float32),
                    ((0, 0), (NUM_OFF, K_PAD - NUM_OFF - D_NUM)))      # (B, 128)
    ids = jnp.concatenate([cat_ids, arr_ids], axis=1).astype(jnp.int32)  # (B, 1+L_ARR)

    grid = (B // TB,)   # == (1,) for this config
    return pl.pallas_call(
        tabular_encoder_kernel,
        out_shape=jax.ShapeDtypeStruct((B, E), jnp.float32),
        grid_spec=pltpu.PrefetchScalarGridSpec(
            num_scalar_prefetch=0,
            grid=grid,
            in_specs=[
                pl.BlockSpec((TB, K_PAD),     lambda i: (i, 0)),   # numeric slab (f32)
                pl.BlockSpec((TB, 1 + L_ARR), lambda i: (i, 0)),   # packed int ids
                pl.BlockSpec((K_PAD, E),      lambda i: (0, 0)),   # fused table (bf16), resident
            ],
            out_specs=pl.BlockSpec((TB, E), lambda i: (i, 0)),
        ),
        compiler_params=pltpu.CompilerParams(dimension_semantics=("parallel",)),
    )(x_pad, ids, table)


def reference(x_num, w_num_t, b_num, cat_ids, arr_ids, emb_cat, emb_arr):
    num_out = x_num @ w_num_t + b_num
    cat_out = emb_cat[cat_ids[:, 0]]
    gathered = emb_arr[arr_ids]                                   # (B, L, E)
    mask = (arr_ids != 0).astype(jnp.float32)[..., None]
    bag_out = (gathered * mask).sum(1) / jnp.maximum(mask.sum(1), 1.0)
    return num_out + cat_out + bag_out


if __name__ == "__main__":
    key = jax.random.PRNGKey(0)
    k = jax.random.split(key, 7)

    # deterministic synthetic parameters (module __init__ shapes)
    w_num_t = jax.random.normal(k[0], (D_NUM, E), jnp.float32) * 0.1   # Linear weight^T
    b_num   = jax.random.normal(k[1], (1, E), jnp.float32) * 0.1       # Linear bias
    emb_cat = jax.random.normal(k[2], (V_CAT, E), jnp.float32)         # Embedding table
    emb_arr = jax.random.normal(k[3], (V_ARR, E), jnp.float32)         # EmbeddingBag table
    emb_arr = emb_arr.at[0].set(0.0)                                   # padding_idx row

    # deterministic synthetic inputs
    x_num   = jax.random.normal(k[4], (B, D_NUM), jnp.float32)
    cat_ids = jax.random.randint(k[5], (B, 1), 0, V_CAT, jnp.int32)
    arr_ids = jax.random.randint(k[6], (B, L_ARR), 0, V_ARR, jnp.int32)  # 0 == padding

    # One-time parameter fusion (outside the per-call forward path).
    table = prepare_tabular_params(w_num_t, b_num, emb_cat, emb_arr)
    table = jax.block_until_ready(table)

    out = tabular_encoder(x_num, cat_ids, arr_ids, table)
    out = jax.block_until_ready(out)

    ref = reference(x_num, w_num_t, b_num, cat_ids, arr_ids, emb_cat, emb_arr)
    assert out.shape == (B, E)
    # bf16 MXU operands + approx reciprocal -> loosened tolerance vs f32 reference.
    assert jnp.allclose(out, ref, atol=5e-2, rtol=5e-2), "mismatch vs reference"

    print("KERNEL_OK")
</pallas_src>

<mosaic_0001>
module attributes {stable_mosaic.version = 11 : i64} {
  func.func @tabular_encoder_kernel(%arg0: i32, %arg1: memref<16x128xf32, #tpu.memory_space<vmem>>, %arg2: memref<16x5xi32, #tpu.memory_space<vmem>>, %arg3: memref<128x128xbf16, #tpu.memory_space<vmem>>, %arg4: memref<16x128xf32, #tpu.memory_space<vmem>>) attributes {dimension_semantics = [#tpu.dimension_semantics<parallel>], iteration_bounds = array<i64: 1>, scalar_prefetch = 0 : i64, scratch_operands = 0 : i64, tpu.core_type = #tpu.core_type<tc>, window_params = [{transform_indices = @transform_0, window_bounds = array<i64: 16, 128>}, {transform_indices = @transform_1, window_bounds = array<i64: 16, 5>}, {pipeline_mode = #tpu.pipeline_mode<synchronous>, transform_indices = @transform_2, window_bounds = array<i64: 128, 128>}, {transform_indices = @transform_3, window_bounds = array<i64: 16, 128>}]} {
    %0 = tpu.iota {dimensions = array<i32: 1>} : vector<16x128xi32>
    %c0 = arith.constant 0 : index
    %c0_0 = arith.constant 0 : index
    %1 = vector.load %arg2[%c0, %c0_0] : memref<16x5xi32, #tpu.memory_space<vmem>>, vector<16x5xi32>
    %2 = vector.extract_strided_slice %1 {offsets = [0, 0], sizes = [16, 1], strides = [1, 1]} : vector<16x5xi32> to vector<16x1xi32>
    %3 = vector.broadcast %2 : vector<16x1xi32> to vector<16x128xi32>
    %4 = arith.cmpi eq, %0, %3 : vector<16x128xi32>
    %5 = arith.extui %4 : vector<16x128xi1> to vector<16x128xi32>
    %6 = arith.sitofp %5 : vector<16x128xi32> to vector<16x128xf32>
    %cst = arith.constant 0.000000e+00 : f32
    %7 = vector.broadcast %cst : f32 to vector<16x128xf32>
    %cst_1 = arith.constant 0.000000e+00 : f32
    %8 = vector.broadcast %cst_1 : f32 to vector<16x1xf32>
    %9 = vector.extract_strided_slice %1 {offsets = [0, 1], sizes = [16, 1], strides = [1, 1]} : vector<16x5xi32> to vector<16x1xi32>
    %c16_i32 = arith.constant 16 : i32
    %10 = vector.broadcast %c16_i32 : i32 to vector<16x1xi32>
    %11 = arith.addi %9, %10 : vector<16x1xi32>
    %12 = vector.broadcast %11 : vector<16x1xi32> to vector<16x128xi32>
    %13 = arith.cmpi eq, %0, %12 : vector<16x128xi32>
    %14 = arith.extui %13 : vector<16x128xi1> to vector<16x128xi32>
    %15 = arith.sitofp %14 : vector<16x128xi32> to vector<16x128xf32>
    %16 = arith.addf %7, %15 : vector<16x128xf32>
    %c16_i32_2 = arith.constant 16 : i32
    %17 = vector.broadcast %c16_i32_2 : i32 to vector<16x1xi32>
    %18 = arith.cmpi ne, %11, %17 : vector<16x1xi32>
    %19 = arith.extui %18 : vector<16x1xi1> to vector<16x1xi32>
    %20 = arith.sitofp %19 : vector<16x1xi32> to vector<16x1xf32>
    %21 = arith.addf %8, %20 : vector<16x1xf32>
    %22 = vector.extract_strided_slice %1 {offsets = [0, 2], sizes = [16, 1], strides = [1, 1]} : vector<16x5xi32> to vector<16x1xi32>
    %c16_i32_3 = arith.constant 16 : i32
    %23 = vector.broadcast %c16_i32_3 : i32 to vector<16x1xi32>
    %24 = arith.addi %22, %23 : vector<16x1xi32>
    %25 = vector.broadcast %24 : vector<16x1xi32> to vector<16x128xi32>
    %26 = arith.cmpi eq, %0, %25 : vector<16x128xi32>
    %27 = arith.extui %26 : vector<16x128xi1> to vector<16x128xi32>
    %28 = arith.sitofp %27 : vector<16x128xi32> to vector<16x128xf32>
    %29 = arith.addf %16, %28 : vector<16x128xf32>
    %c16_i32_4 = arith.constant 16 : i32
    %30 = vector.broadcast %c16_i32_4 : i32 to vector<16x1xi32>
    %31 = arith.cmpi ne, %24, %30 : vector<16x1xi32>
    %32 = arith.extui %31 : vector<16x1xi1> to vector<16x1xi32>
    %33 = arith.sitofp %32 : vector<16x1xi32> to vector<16x1xf32>
    %34 = arith.addf %21, %33 : vector<16x1xf32>
    %35 = vector.extract_strided_slice %1 {offsets = [0, 3], sizes = [16, 1], strides = [1, 1]} : vector<16x5xi32> to vector<16x1xi32>
    %c16_i32_5 = arith.constant 16 : i32
    %36 = vector.broadcast %c16_i32_5 : i32 to vector<16x1xi32>
    %37 = arith.addi %35, %36 : vector<16x1xi32>
    %38 = vector.broadcast %37 : vector<16x1xi32> to vector<16x128xi32>
    %39 = arith.cmpi eq, %0, %38 : vector<16x128xi32>
    %40 = arith.extui %39 : vector<16x128xi1> to vector<16x128xi32>
    %41 = arith.sitofp %40 : vector<16x128xi32> to vector<16x128xf32>
    %42 = arith.addf %29, %41 : vector<16x128xf32>
    %c16_i32_6 = arith.constant 16 : i32
    %43 = vector.broadcast %c16_i32_6 : i32 to vector<16x1xi32>
    %44 = arith.cmpi ne, %37, %43 : vector<16x1xi32>
    %45 = arith.extui %44 : vector<16x1xi1> to vector<16x1xi32>
    %46 = arith.sitofp %45 : vector<16x1xi32> to vector<16x1xf32>
    %47 = arith.addf %34, %46 : vector<16x1xf32>
    %48 = vector.extract_strided_slice %1 {offsets = [0, 4], sizes = [16, 1], strides = [1, 1]} : vector<16x5xi32> to vector<16x1xi32>
    %c16_i32_7 = arith.constant 16 : i32
    %49 = vector.broadcast %c16_i32_7 : i32 to vector<16x1xi32>
    %50 = arith.addi %48, %49 : vector<16x1xi32>
    %51 = vector.broadcast %50 : vector<16x1xi32> to vector<16x128xi32>
    %52 = arith.cmpi eq, %0, %51 : vector<16x128xi32>
    %53 = arith.extui %52 : vector<16x128xi1> to vector<16x128xi32>
    %54 = arith.sitofp %53 : vector<16x128xi32> to vector<16x128xf32>
    %55 = arith.addf %42, %54 : vector<16x128xf32>
    %c16_i32_8 = arith.constant 16 : i32
    %56 = vector.broadcast %c16_i32_8 : i32 to vector<16x1xi32>
    %57 = arith.cmpi ne, %50, %56 : vector<16x1xi32>
    %58 = arith.extui %57 : vector<16x1xi1> to vector<16x1xi32>
    %59 = arith.sitofp %58 : vector<16x1xi32> to vector<16x1xf32>
    %60 = arith.addf %47, %59 : vector<16x1xf32>
    %c16_i32_9 = arith.constant 16 : i32
    %61 = vector.broadcast %c16_i32_9 : i32 to vector<16x128xi32>
    %62 = arith.cmpi eq, %0, %61 : vector<16x128xi32>
    %cst_10 = arith.constant 0.000000e+00 : f32
    %63 = vector.broadcast %cst_10 : f32 to vector<16x128xf32>
    %64 = arith.select %62, %63, %55 : vector<16x128xi1>, vector<16x128xf32>
    %cst_11 = arith.constant 1.000000e+00 : f32
    %65 = vector.broadcast %cst_11 : f32 to vector<16x1xf32>
    %66 = arith.maximumf %60, %65 : vector<16x1xf32>
    %67 = tpu.reciprocal %66 {approx = true} : vector<16x1xf32> -> vector<16x1xf32>
    %68 = vector.broadcast %67 : vector<16x1xf32> to vector<16x128xf32>
    %69 = arith.mulf %64, %68 : vector<16x128xf32>
    %70 = arith.addf %6, %69 : vector<16x128xf32>
    %c0_12 = arith.constant 0 : index
    %c0_13 = arith.constant 0 : index
    %71 = vector.load %arg1[%c0_12, %c0_13] : memref<16x128xf32, #tpu.memory_space<vmem>>, vector<16x128xf32>
    %72 = arith.addf %70, %71 : vector<16x128xf32>
    %c36_i32 = arith.constant 36 : i32
    %73 = vector.broadcast %c36_i32 : i32 to vector<16x128xi32>
    %74 = arith.cmpi eq, %0, %73 : vector<16x128xi32>
    %75 = arith.extui %74 : vector<16x128xi1> to vector<16x128xi32>
    %76 = arith.sitofp %75 : vector<16x128xi32> to vector<16x128xf32>
    %77 = arith.addf %72, %76 : vector<16x128xf32>
    %78 = arith.truncf %77 : vector<16x128xf32> to vector<16x128xbf16>
    %c0_14 = arith.constant 0 : index
    %c0_15 = arith.constant 0 : index
    %79 = vector.load %arg3[%c0_14, %c0_15] : memref<128x128xbf16, #tpu.memory_space<vmem>>, vector<128x128xbf16>
    %cst_16 = arith.constant dense<0.000000e+00> : vector<16x128xf32>
    %80 = tpu.matmul %78, %79, %cst_16 {dimension_numbers = #tpu.dot_dimension_numbers<[1], [0], [0], [1], [0, 0, 1, 1], [], []>} : vector<16x128xbf16>, vector<128x128xbf16>, vector<16x128xf32> -> vector<16x128xf32>
    %c0_17 = arith.constant 0 : index
    %c0_18 = arith.constant 0 : index
    %81 = vector.load %arg4[%c0_17, %c0_18] : memref<16x128xf32, #tpu.memory_space<vmem>>, vector<16x128xf32>
    tpu.vector_store %arg4[%c0_17, %c0_18], %80 {strides = array<i32>} : memref<16x128xf32, #tpu.memory_space<vmem>>, vector<16x128xf32>,
    return
  }
  func.func @transform_0(%arg0: i32) -> (i32, i32) {
    %c0_i32 = arith.constant 0 : i32
    %c0_i32_0 = arith.constant 0 : i32
    return %arg0, %c0_i32 : i32, i32
  }
  func.func @transform_1(%arg0: i32) -> (i32, i32) {
    %c0_i32 = arith.constant 0 : i32
    %c0_i32_0 = arith.constant 0 : i32
    return %arg0, %c0_i32 : i32, i32
  }
  func.func @transform_2(%arg0: i32) -> (i32, i32) {
    %c0_i32 = arith.constant 0 : i32
    %c0_i32_0 = arith.constant 0 : i32
    %c0_i32_1 = arith.constant 0 : i32
    return %c0_i32, %c0_i32_0 : i32, i32
  }
  func.func @transform_3(%arg0: i32) -> (i32, i32) {
    %c0_i32 = arith.constant 0 : i32
    %c0_i32_0 = arith.constant 0 : i32
    return %arg0, %c0_i32 : i32, i32
  }
}

</mosaic_0001>

<bundles_post_ra>
// kernel: tpu_custom_call.1
= control target key start
LH: loop header
LB: loop body
LE: loop exit
PB: predicated region body
PF: predicated region fallthrough
CT: control target
= control target key end

     0   :  { %8 = vsyncpa [#allocation3], 0  ;;  %s487_s0 = inlined_call_operand.vmem [shape: f32[16,128], index: 0, kind: input, shape index: {}]   ;;  %s488_s1 = inlined_call_operand.vmem [shape: s32[16,5], index: 1, kind: input, shape index: {}]   ;;  %s489_s2 = inlined_call_operand.hbm [shape: bf16[128,128], index: 2, kind: input, shape index: {}]   ;;  %s490_s3 = inlined_call_operand.hbm [shape: f32[16,128], index: 3, kind: output, shape index: {}]  }
   0x1   :  { %9 = vsyncpa [#allocation4], 0  ;;  %s18_s14 = sshll.u32 %s489_s2, 4  ;;  %s421_s15 = smov [#allocation2]   ;;  %s19_s14 = int_to_ptr.hbm [resolvable:$true] %s18_s14 }
   0x2   :  { %s20_s16 = sshll.u32 %s421_s15, 4  ;;  %s422_s17 = smov 64   ;;  %s21_s16 = int_to_ptr.vmem [resolvable:$true] %s20_s16 }
   0x3   :  { %s423_s18 = smov 4  }
   0x4   :  { %26 = dma.hbm_to_vmem [thread:$0]  %s19_s14, 1024, %s21_s16, [#allocation3], %s422_s17, %s422_s17, %s423_s18  }
   0x5   :  { %417 = dma.done.wait [#allocation3], 1024  }
   0x6   :  { %418 = vsyncadd [#allocation3], 4294966272  ;;  %v424_v0 = vmov 1   ;;  %v425_v1 = vmov 2   ;;  %v33_v2 = vld [vmem:[%s488_s1] sm:$0xff]  ;;  %v34_v3 = vld [vmem:[%s488_s1 + $0x8] sm:$0xff]  ;;  %v31_v41 = vlaneseq }
   0x7   :  { %352 = vset.pattern.permute.xlu1 %v424_v0  ;;  %353 = vset.pattern.permute.xlu2 %v424_v0  ;;  %v47_v4 = vadd.s32 16, %v33_v2  ;;  %v48_v5 = vadd.s32 16, %v34_v3  ;;  %v426_v6 = vmov 0.0   ;;  %s427_s22 = smov 127   ;;  %s428_s23 = smov 125   ;;  %v430_v10 = vmov 3  }
   0x8   :  { %355 = vset.pattern.permute.xlu0 %v425_v1  ;;  %s429_s24 = smov 126   ;;  %v431_v11 = vmov 4   ;;  %v432_v12 = vmov 0   ;;  %v321_v32 = vld [vmem:[#allocation2 + $0x38] sm:$0xff]  ;;  %v320_v33 = vld [vmem:[#allocation2 + $0x30] sm:$0xff]  ;;  %v319_v35 = vld [vmem:[#allocation2 + $0x28] sm:$0xff] }
   0x9   :  { %vm63_vm0 = vcmp.ne.s32.totalorder %v47_v4, 16  ;;  %vm64_vm1 = vcmp.ne.s32.totalorder %v48_v5, 16  ;;  %53 = vperm.xlu2 %353, %v48_v5   ;;  %234 = vmatpush.bf16.msra.mxu0 %v321_v32  ;;  %v318_v36 = vld [vmem:[#allocation2 + $0x20] sm:$0xff]  ;;  %v317_v37 = vld [vmem:[#allocation2 + $0x18] sm:$0xff]  ;;  %v316_v40 = vld [vmem:[#allocation2 + $0x10] sm:$0xff]  ;;  %v32_v44 = vand.u32 127, %v31_v41 }
   0xa   :  { %v273_v7 = vsel %vm63_vm0, 1.0, %v426_v6  ;;  %v274_v8 = vsel %vm64_vm1, 1.0, %v426_v6  ;;  %v315_v42 = vld [vmem:[#allocation2 + $0x8] sm:$0xff]  ;;  %v314_v46 = vld [vmem:[#allocation2] sm:$0xff]  ;;  %s433_s28 = smov [#allocation5]   ;;  %s256_s5 = sshll.u32 %s490_s3, 4  ;;  %s257_s5 = int_to_ptr.hbm [resolvable:$true] %s256_s5 }
   0xb   :  { %v337_v9 = vpack.i.bf16 %v274_v8, %v273_v7  ;;  %vm139_vm10 = vcmp.eq.s32.totalorder %v32_v44, 16  ;;  %vm164_vm13 = vcmp.eq.s32.totalorder %v32_v44, 36  ;;  %s254_s29 = sshll.u32 %s433_s28, 4  ;;  %s435_s6 = smov 8   ;;  %s255_s29 = int_to_ptr.vmem [resolvable:$true] %s254_s29 }
   0xd   :  { %338 = vrot.lane.b32.xlu0 %v337_v9, %s427_s22  ;;  %348 = vrot.lane.b32.xlu1 %v337_v9, %s428_s23 }
   0xe   :  { %235 = vmatpush.bf16.msra.mxu0 %v320_v33 }
  0x11   :  { %354 = vset.pattern.permute.xlu2 %v425_v1 }
  0x12   :  { %72 = vperm.xlu2 %354, %v47_v4   ;;  %236 = vmatpush.bf16.msra.mxu0 %v319_v35 }
  0x15   :  { %343 = vrot.lane.b32.xlu0 %v337_v9, %s429_s24  ;;  %50 = vperm.xlu1 %352, %v47_v4  }
  0x16   :  { %237 = vmatpush.bf16.msra.mxu0 %v318_v36 }
  0x1a   :  { %357 = vset.pattern.permute.xlu2 %v430_v10  ;;  %238 = vmatpush.bf16.msra.mxu0 %v317_v37 }
  0x1b   :  { %99 = vperm.xlu2 %357, %v48_v5  }
  0x1d   :  { %356 = vset.pattern.permute.xlu1 %v430_v10  ;;  %75 = vperm.xlu0 %355, %v48_v5  }
  0x1e   :  { %96 = vperm.xlu1 %356, %v47_v4   ;;  %239 = vmatpush.bf16.msra.mxu0 %v316_v40 }
  0x22   :  { %240 = vmatpush.bf16.msra.mxu0 %v315_v42 }
  0x23   :  { %359 = vset.pattern.permute.xlu2 %v431_v11 }
  0x24   :  { %121 = vperm.xlu2 %359, %v48_v5  }
  0x25   :  { %360 = vset.pattern.permute.xlu0 %v432_v12 }
  0x26   :  { %358 = vset.pattern.permute.xlu1 %v431_v11  ;;  %36 = vperm.xlu0 %360, %v33_v2  }
  0x27   :  { %118 = vperm.xlu1 %358, %v47_v4   ;;  %241 = vmatpush.bf16.msra.mxu0 %v314_v46 }
  0x2c   :  { %362 = vset.pattern.permute.xlu2 %v424_v0 }
  0x2e   :  { %364 = vset.pattern.permute.xlu0 %v424_v0 }
  0x2f   :  { %361 = vset.pattern.permute.xlu1 %v432_v12 }
  0x30   :  { %39 = vperm.xlu1 %361, %v34_v3  }
  0x38   :  { %363 = vset.pattern.permute.xlu1 %v424_v0 }
  0x63   :  { %v54_v34 = vpop.permute.xlu2 %53 }
  0x64   :  { %vm56_vm5 = vcmp.eq.s32.totalorder %v32_v44, %v54_v34 }
  0x65   :  { %v272_v54 = vsel %vm56_vm5, 1.0, %v426_v6 }
  0x6c   :  { %v73_v39 = vpop.permute.xlu2 %72 }
  0x6d   :  { %vm77_vm2 = vcmp.eq.s32.totalorder %v32_v44, %v73_v39 }
  0x6e   :  { %v275_v47 = vsel %vm77_vm2, 1.0, %v426_v6 }
  0x75   :  { %v100_v45 = vpop.permute.xlu2 %99 }
  0x76   :  { %vm102_vm8 = vcmp.eq.s32.totalorder %v32_v44, %v100_v45 }
  0x77   :  { %v278_v59 = vsel %vm102_vm8, 1.0, %v426_v6 }
  0x7e   :  { %v122_v52 = vpop.permute.xlu2 %121 }
  0x7f   :  { %v339_v13 = vpop.permute.xlu0 %338  ;;  %v349_v16 = vpop.permute.xlu1 %348  ;;  %vm124_vm9 = vcmp.eq.s32.totalorder %v32_v44, %v122_v52 }
  0x80   :  { %v341_v14 = vunpack.i.h.bf16 %v339_v13  ;;  %v340_v15 = vunpack.i.l.bf16 %v339_v13  ;;  %v351_v18 = vunpack.i.h.bf16 %v349_v16  ;;  %v350_v19 = vunpack.i.l.bf16 %v349_v16  ;;  %v161_v13 = vld [vmem:[%s487_s0 + $0x8] sm:$0xff] }
  0x81   :  { %v280_v1 = vsel %vm124_vm9, 1.0, %v426_v6  ;;  %v281_v16 = vsel %vm164_vm13, 1.0, %v426_v6 }
  0x82   :  { %v94_v20 = vadd.f32 %v341_v14, %v274_v8  ;;  %v93_v21 = vadd.f32 %v340_v15, %v273_v7  ;;  %v160_v8 = vld [vmem:[%s487_s0] sm:$0xff]  ;;  %s434_s0 = smov 128  }
  0x87   :  { %v344_v17 = vpop.permute.xlu0 %343  ;;  %v51_v38 = vpop.permute.xlu1 %50 }
  0x88   :  { %v346_v22 = vunpack.i.h.bf16 %v344_v17  ;;  %v345_v23 = vunpack.i.l.bf16 %v344_v17  ;;  %vm55_vm3 = vcmp.eq.s32.totalorder %v32_v44, %v51_v38 }
  0x89   :  { %v271_v48 = vsel %vm55_vm3, 1.0, %v426_v6 }
  0x8a   :  { %v115_v24 = vadd.f32 %v345_v23, %v93_v21  ;;  %v116_v25 = vadd.f32 %v346_v22, %v94_v20  ;;  %v83_v51 = vadd.f32 %v275_v47, %v271_v48 }
  0x8c   :  { %v137_v26 = vadd.f32 %v350_v19, %v115_v24  ;;  %v138_v27 = vadd.f32 %v351_v18, %v116_v25 }
  0x8e   :  { %v142_v28 = vmax.f32 %v137_v26, 1.0  ;;  %v143_v29 = vmax.f32 %v138_v27, 1.0 }
  0x8f   :  { %v76_v49 = vpop.permute.xlu0 %75 }
  0x90   :  { %365 = vrcp.f32 %v142_v28  ;;  %v97_v43 = vpop.permute.xlu1 %96  ;;  %vm78_vm6 = vcmp.eq.s32.totalorder %v32_v44, %v76_v49 }
  0x91   :  { %367 = vrcp.f32 %v143_v29  ;;  %vm101_vm4 = vcmp.eq.s32.totalorder %v32_v44, %v97_v43  ;;  %v276_v55 = vsel %vm78_vm6, 1.0, %v426_v6 }
  0x92   :  { %v277_v53 = vsel %vm101_vm4, 1.0, %v426_v6  ;;  %v84_v58 = vadd.f32 %v276_v55, %v272_v54 }
  0x93   :  { %v107_v56 = vadd.f32 %v277_v53, %v83_v51 }
  0x94   :  { %v108_v63 = vadd.f32 %v278_v59, %v84_v58 }
  0x96   :  { %v366_v30 = vpop.eup %365  ;;  %v130_v4 = vadd.f32 %v280_v1, %v108_v63 }
  0x97   :  { %v368_v31 = vpop.eup %367  ;;  %148 = vperm.xlu2 %362, %v366_v30  }
  0x98   :  { %153 = vperm.xlu1 %363, %v368_v31   ;;  %v37_v61 = vpop.permute.xlu0 %36  ;;  %v141_v9 = vsel %vm139_vm10, 0.0, %v130_v4 }
  0x99   :  { %v119_v50 = vpop.permute.xlu1 %118  ;;  %vm41_vm11 = vcmp.eq.s32.totalorder %v32_v44, %v37_v61 }
  0x9a   :  { %vm123_vm7 = vcmp.eq.s32.totalorder %v32_v44, %v119_v50  ;;  %v269_v5 = vsel %vm41_vm11, 1.0, %v426_v6 }
  0x9b   :  { %v279_v57 = vsel %vm123_vm7, 1.0, %v426_v6 }
  0x9c   :  { %v129_v60 = vadd.f32 %v279_v57, %v107_v56 }
  0x9e   :  { %v140_v2 = vsel %vm139_vm10, 0.0, %v129_v60 }
  0xa2   :  { %v40_v62 = vpop.permute.xlu1 %39 }
  0xa3   :  { %vm42_vm12 = vcmp.eq.s32.totalorder %v32_v44, %v40_v62 }
  0xa4   :  { %v270_v12 = vsel %vm42_vm12, 1.0, %v426_v6 }
  0xf1   :  { %v149_v0 = vpop.permute.xlu2 %148 }
  0xf2   :  { %v156_v3 = vmul.f32 %v149_v0, %v140_v2 }
  0xf4   :  { %v158_v7 = vadd.f32 %v269_v5, %v156_v3 }
  0xf6   :  { %v162_v14 = vadd.f32 %v160_v8, %v158_v7 }
  0xf8   :  { %v167_v18 = vadd.f32 %v281_v16, %v162_v14 }
 0x10a   :  { %v154_v10 = vpop.permute.xlu1 %153 }
 0x10b   :  { %v157_v11 = vmul.f32 %v154_v10, %v141_v9 }
 0x10d   :  { %v159_v15 = vadd.f32 %v270_v12, %v157_v11 }
 0x10f   :  { %v163_v17 = vadd.f32 %v161_v13, %v159_v15 }
 0x111   :  { %v168_v19 = vadd.f32 %v281_v16, %v163_v17 }
 0x113   :  { %v169_v20 = vpack.c.bf16 %v168_v19, %v167_v18 }
 0x115   :  { %242 = vmatmul.bf16.vlgmr.msra.gmra.mxu0 %v169_v20 }
 0x192   :  { %v243_v21 = vpop.f32.mrf.mxu0 }
 0x193   :  { %248 = vst [vmem:[#allocation5] sm:$0xff] %v243_v21 }
 0x19a   :  { %v245_v22 = vpop.f32.mrf.mxu0 }
 0x19b   :  { %249 = vst [vmem:[#allocation5 + $0x8] sm:$0xff] %v245_v22 }
 0x19c   :  { %262 = dma.vmem_to_hbm [thread:$0]  %s255_s29, 256, %s257_s5, [#allocation4], %s434_s0, %s434_s0, %s435_s6  }
 0x19d   :  { %419 = dma.done.wait [#allocation4], 256  }
 0x19e   :  { %420 = vsyncadd [#allocation4], 4294967040 }
 0x19f   :  { %267 = vsyncpa [#allocation3], 1 }
 0x1a0   :  { %268 = vsyncpa [#allocation4], 1 }

</bundles_post_ra>
